<compile_context>
chip_gen: v7x
topology: tpu7x:2x2x1
jax: 0.10.0
libtpu: 0.0.40
codegen_flags: <defaults>
</compile_context>

<pallas_src>
import jax
import jax.numpy as jnp
from jax.experimental import pallas as pl
from jax.experimental.pallas import tpu as pltpu

LANE = 128


def _round_up(x, m):
    return (x + m - 1) // m * m


# ---------------------------------------------------------------------------
# Pallas kernel: gather(emb, ids) -> ReLU -> fused GRU cell -> Linear -> LogSoftmax
# ---------------------------------------------------------------------------
def decoder_kernel(ids_ref, emb_ref, h_ref, wg_ref, bg_ref, wo_ref, bo_ref,
                   pred_ref, hnew_ref, xh_ref):
    """Shapes (all lane-padded to multiples of 128 on the last axis):
         ids  : (B,)           int32  SMEM
         emb  : (Vocab, Ep)    f32    embedding table (cols zero-padded E->Ep)
         h    : (B, Hp)        f32    hidden state    (cols zero-padded H->Hp)
         wg   : (Ep+Hp, 4*Hp)  f32    fused [x|h] -> [r | z | n_i | n_h]
         bg   : (1, 4*Hp)      f32
         wo   : (Hp, Vp)       f32
         bo   : (1, Vp)        f32    (-1e30 in padded vocab columns)
         pred : (B, Vp)        f32    out  (lane-dense)
         hnew : (B, Hp)        f32    out  (lane-dense)
         xh   : (B, Ep+Hp)     f32    VMEM scratch (fused matmul operand)
    """
    B, Hp = h_ref.shape
    Ep = emb_ref.shape[1]

    # ---- in-kernel embedding gather + ReLU, packed next to h -------------
    # B is small and static, so this unrolls into B dynamic-sliced row copies.
    for b in range(B):
        row = emb_ref[pl.ds(ids_ref[b], 1), :]                 # (1, Ep)
        xh_ref[pl.ds(b, 1), 0:Ep] = jnp.maximum(row, 0.0)      # F.relu(embedding(input))
    xh_ref[:, Ep:Ep + Hp] = h_ref[...]

    # ---- single fused GRU projection (one MXU call instead of two) -------
    g = jnp.dot(xh_ref[...], wg_ref[...],
                preferred_element_type=jnp.float32) + bg_ref[...]        # (B, 4*Hp)

    # gate slices are lane-aligned (multiples of 128) -> free vreg views
    r = jax.nn.sigmoid(g[:, 0:Hp])
    z = jax.nn.sigmoid(g[:, Hp:2 * Hp])
    n = jnp.tanh(g[:, 2 * Hp:3 * Hp] + r * g[:, 3 * Hp:4 * Hp])
    h = h_ref[...]
    h_new = (1.0 - z) * n + z * h                                        # (B, Hp)

    # ---- output projection + numerically stable log-softmax --------------
    logits = jnp.dot(h_new, wo_ref[...],
                     preferred_element_type=jnp.float32) + bo_ref[...]   # (B, Vp)
    m = jnp.max(logits, axis=1, keepdims=True)
    shifted = logits - m
    lse = jnp.log(jnp.sum(jnp.exp(shifted), axis=1, keepdims=True))
    pred_ref[...] = shifted - lse
    hnew_ref[...] = h_new


# ---------------------------------------------------------------------------
# Parameter construction (PyTorch-equivalent layout) and one-time repacking
# ---------------------------------------------------------------------------
def make_decoder_params(output_dim, hidden_dim, embbed_dim, key):
    """Raw Decoder parameters (weights pre-transposed to (in, out)), all f32."""
    ks = jax.random.split(key, 7)
    scale = 0.1
    return {
        "embedding": scale * jax.random.normal(ks[0], (output_dim, embbed_dim), jnp.float32),
        "w_ih": scale * jax.random.normal(ks[1], (embbed_dim, 3 * hidden_dim), jnp.float32),
        "w_hh": scale * jax.random.normal(ks[2], (hidden_dim, 3 * hidden_dim), jnp.float32),
        "b_ih": scale * jax.random.normal(ks[3], (3 * hidden_dim,), jnp.float32),
        "b_hh": scale * jax.random.normal(ks[4], (3 * hidden_dim,), jnp.float32),
        "w_out": scale * jax.random.normal(ks[5], (hidden_dim, output_dim), jnp.float32),
        "b_out": scale * jax.random.normal(ks[6], (output_dim,), jnp.float32),
    }


def pack_decoder_params(params):
    """One-time repack into the fused, lane-padded layout the kernel expects."""
    V, E = params["embedding"].shape
    H = params["w_hh"].shape[0]
    Ep, Hp, Vp = _round_up(E, LANE), _round_up(H, LANE), _round_up(V, LANE)

    w_ih, w_hh = params["w_ih"], params["w_hh"]
    b_ih, b_hh = params["b_ih"], params["b_hh"]

    # Embedding table: zero-pad columns E -> Ep (relu(0)=0 and pad rows of wg are 0).
    emb = jnp.zeros((V, Ep), jnp.float32).at[:, :E].set(params["embedding"])

    # Fused gate weight: [relu(x) | h] @ wg -> [r | z | n_input | n_hidden]
    wg = jnp.zeros((Ep + Hp, 4 * Hp), jnp.float32)
    # x-part rows [0:E]                         (PyTorch gate order: r, z, n)
    wg = wg.at[:E, 0 * Hp:0 * Hp + H].set(w_ih[:, 0 * H:1 * H])          # r (input)
    wg = wg.at[:E, 1 * Hp:1 * Hp + H].set(w_ih[:, 1 * H:2 * H])          # z (input)
    wg = wg.at[:E, 2 * Hp:2 * Hp + H].set(w_ih[:, 2 * H:3 * H])          # n (input)
    # h-part rows [Ep:Ep+H]
    wg = wg.at[Ep:Ep + H, 0 * Hp:0 * Hp + H].set(w_hh[:, 0 * H:1 * H])   # r (hidden)
    wg = wg.at[Ep:Ep + H, 1 * Hp:1 * Hp + H].set(w_hh[:, 1 * H:2 * H])   # z (hidden)
    wg = wg.at[Ep:Ep + H, 3 * Hp:3 * Hp + H].set(w_hh[:, 2 * H:3 * H])   # n (hidden)

    bg = jnp.zeros((1, 4 * Hp), jnp.float32)
    bg = bg.at[0, 0 * Hp:0 * Hp + H].set(b_ih[0 * H:1 * H] + b_hh[0 * H:1 * H])  # r
    bg = bg.at[0, 1 * Hp:1 * Hp + H].set(b_ih[1 * H:2 * H] + b_hh[1 * H:2 * H])  # z
    bg = bg.at[0, 2 * Hp:2 * Hp + H].set(b_ih[2 * H:3 * H])                      # n: b_in
    bg = bg.at[0, 3 * Hp:3 * Hp + H].set(b_hh[2 * H:3 * H])                      # n: b_hn

    wo = jnp.zeros((Hp, Vp), jnp.float32).at[:H, :V].set(params["w_out"])
    # Padded vocab columns get a huge negative bias so they vanish from the log-softmax.
    bo = jnp.full((1, Vp), -1e30, jnp.float32).at[0, :V].set(params["b_out"])

    return {"emb": emb, "wg": wg, "bg": bg, "wo": wo, "bo": bo,
            "E": E, "H": H, "V": V, "Ep": Ep, "Hp": Hp, "Vp": Vp}


# ---------------------------------------------------------------------------
# Wrapper: pad hidden, call the kernel, strip the lane padding
# ---------------------------------------------------------------------------
def decoder_forward(packed, token_ids, hidden):
    """token_ids: int array flattening to (B,); hidden: (1, B, H) f32 (PyTorch layout)."""
    H, V, Ep, Hp, Vp = packed["H"], packed["V"], packed["Ep"], packed["Hp"], packed["Vp"]

    ids = token_ids.reshape(-1).astype(jnp.int32)             # input.view(1, -1)
    B = ids.shape[0]
    h0 = hidden[0]                                            # (B, H)
    h0p = jnp.zeros((B, Hp), jnp.float32).at[:, :H].set(h0)   # lane-pad hidden

    vmem = pl.BlockSpec(memory_space=pltpu.MemorySpace.VMEM)
    smem = pl.BlockSpec(memory_space=pltpu.MemorySpace.SMEM)

    pred_p, hnew_p = pl.pallas_call(
        decoder_kernel,
        out_shape=(
            jax.ShapeDtypeStruct((B, Vp), jnp.float32),
            jax.ShapeDtypeStruct((B, Hp), jnp.float32),
        ),
        in_specs=[smem, vmem, vmem, vmem, vmem, vmem, vmem],
        out_specs=(vmem, vmem),
        scratch_shapes=[pltpu.VMEM((B, Ep + Hp), jnp.float32)],
    )(ids, packed["emb"], h0p, packed["wg"], packed["bg"], packed["wo"], packed["bo"])

    prediction = pred_p[:, :V]                                # (B, V)
    new_hidden = hnew_p[:, :H][None, :, :]                    # (1, B, H)
    return prediction, new_hidden


if __name__ == "__main__":
    output_dim = 16   # vocab size
    hidden_dim = 32
    embbed_dim = 32
    batch = 8

    key = jax.random.PRNGKey(0)
    kp, kt, kh = jax.random.split(key, 3)

    raw = make_decoder_params(output_dim, hidden_dim, embbed_dim, kp)
    packed = pack_decoder_params(raw)

    token_ids = jax.random.randint(kt, (batch,), 0, output_dim, dtype=jnp.int32)
    hidden = 0.1 * jax.random.normal(kh, (1, batch, hidden_dim), jnp.float32)

    prediction, new_hidden = decoder_forward(packed, token_ids, hidden)
    jax.block_until_ready((prediction, new_hidden))

    assert prediction.shape == (batch, output_dim)
    assert new_hidden.shape == (1, batch, hidden_dim)
    # log-softmax rows should exponentiate-sum to ~1
    assert jnp.allclose(jnp.exp(prediction).sum(axis=1), 1.0, atol=1e-4)

    # Pure-JAX reference of the same forward pass (validates the fused/padded repack).
    H = hidden_dim
    x_ref = jnp.maximum(raw["embedding"][token_ids], 0.0)
    h_in = hidden[0]
    gi = x_ref @ raw["w_ih"] + raw["b_ih"]
    gh = h_in @ raw["w_hh"] + raw["b_hh"]
    r_ = jax.nn.sigmoid(gi[:, :H] + gh[:, :H])
    z_ = jax.nn.sigmoid(gi[:, H:2 * H] + gh[:, H:2 * H])
    n_ = jnp.tanh(gi[:, 2 * H:] + r_ * gh[:, 2 * H:])
    h_ref = (1.0 - z_) * n_ + z_ * h_in
    pred_ref = jax.nn.log_softmax(h_ref @ raw["w_out"] + raw["b_out"], axis=1)
    assert jnp.allclose(prediction, pred_ref, atol=1e-4)
    assert jnp.allclose(new_hidden[0], h_ref, atol=1e-4)

    print("KERNEL_OK")
</pallas_src>

<mosaic_0001>
module attributes {stable_mosaic.version = 11 : i64} {
  func.func @decoder_kernel(%arg0: memref<8xi32, #tpu.memory_space<smem>>, %arg1: memref<16x128xf32, #tpu.memory_space<vmem>>, %arg2: memref<8x128xf32, #tpu.memory_space<vmem>>, %arg3: memref<256x512xf32, #tpu.memory_space<vmem>>, %arg4: memref<1x512xf32, #tpu.memory_space<vmem>>, %arg5: memref<128x128xf32, #tpu.memory_space<vmem>>, %arg6: memref<1x128xf32, #tpu.memory_space<vmem>>, %arg7: memref<8x128xf32, #tpu.memory_space<vmem>>, %arg8: memref<8x128xf32, #tpu.memory_space<vmem>>, %arg9: memref<8x256xf32, #tpu.memory_space<vmem>>) attributes {dimension_semantics = [], scalar_prefetch = 0 : i64, scratch_operands = 1 : i64, tpu.core_type = #tpu.core_type<tc>} {
    %c0 = arith.constant 0 : index
    %0 = memref.load %arg0[%c0] : memref<8xi32, #tpu.memory_space<smem>>
    %1 = arith.index_cast %0 : i32 to index
    %c0_0 = arith.constant 0 : index
    %2 = vector.load %arg1[%1, %c0_0] : memref<16x128xf32, #tpu.memory_space<vmem>>, vector<1x128xf32>
    %cst = arith.constant 0.000000e+00 : f32
    %3 = vector.broadcast %cst : f32 to vector<1x128xf32>
    %4 = arith.maximumf %2, %3 : vector<1x128xf32>
    %c0_1 = arith.constant 0 : index
    %c0_2 = arith.constant 0 : index
    %5 = vector.load %arg9[%c0_1, %c0_2] : memref<8x256xf32, #tpu.memory_space<vmem>>, vector<1x128xf32>
    tpu.vector_store %arg9[%c0_1, %c0_2], %4 {strides = array<i32>} : memref<8x256xf32, #tpu.memory_space<vmem>>, vector<1x128xf32>,
    %c1 = arith.constant 1 : index
    %6 = memref.load %arg0[%c1] : memref<8xi32, #tpu.memory_space<smem>>
    %7 = arith.index_cast %6 : i32 to index
    %c0_3 = arith.constant 0 : index
    %8 = vector.load %arg1[%7, %c0_3] : memref<16x128xf32, #tpu.memory_space<vmem>>, vector<1x128xf32>
    %cst_4 = arith.constant 0.000000e+00 : f32
    %9 = vector.broadcast %cst_4 : f32 to vector<1x128xf32>
    %10 = arith.maximumf %8, %9 : vector<1x128xf32>
    %c1_5 = arith.constant 1 : index
    %c0_6 = arith.constant 0 : index
    %11 = vector.load %arg9[%c1_5, %c0_6] : memref<8x256xf32, #tpu.memory_space<vmem>>, vector<1x128xf32>
    tpu.vector_store %arg9[%c1_5, %c0_6], %10 {strides = array<i32>} : memref<8x256xf32, #tpu.memory_space<vmem>>, vector<1x128xf32>,
    %c2 = arith.constant 2 : index
    %12 = memref.load %arg0[%c2] : memref<8xi32, #tpu.memory_space<smem>>
    %13 = arith.index_cast %12 : i32 to index
    %c0_7 = arith.constant 0 : index
    %14 = vector.load %arg1[%13, %c0_7] : memref<16x128xf32, #tpu.memory_space<vmem>>, vector<1x128xf32>
    %cst_8 = arith.constant 0.000000e+00 : f32
    %15 = vector.broadcast %cst_8 : f32 to vector<1x128xf32>
    %16 = arith.maximumf %14, %15 : vector<1x128xf32>
    %c2_9 = arith.constant 2 : index
    %c0_10 = arith.constant 0 : index
    %17 = vector.load %arg9[%c2_9, %c0_10] : memref<8x256xf32, #tpu.memory_space<vmem>>, vector<1x128xf32>
    tpu.vector_store %arg9[%c2_9, %c0_10], %16 {strides = array<i32>} : memref<8x256xf32, #tpu.memory_space<vmem>>, vector<1x128xf32>,
    %c3 = arith.constant 3 : index
    %18 = memref.load %arg0[%c3] : memref<8xi32, #tpu.memory_space<smem>>
    %19 = arith.index_cast %18 : i32 to index
    %c0_11 = arith.constant 0 : index
    %20 = vector.load %arg1[%19, %c0_11] : memref<16x128xf32, #tpu.memory_space<vmem>>, vector<1x128xf32>
    %cst_12 = arith.constant 0.000000e+00 : f32
    %21 = vector.broadcast %cst_12 : f32 to vector<1x128xf32>
    %22 = arith.maximumf %20, %21 : vector<1x128xf32>
    %c3_13 = arith.constant 3 : index
    %c0_14 = arith.constant 0 : index
    %23 = vector.load %arg9[%c3_13, %c0_14] : memref<8x256xf32, #tpu.memory_space<vmem>>, vector<1x128xf32>
    tpu.vector_store %arg9[%c3_13, %c0_14], %22 {strides = array<i32>} : memref<8x256xf32, #tpu.memory_space<vmem>>, vector<1x128xf32>,
    %c4 = arith.constant 4 : index
    %24 = memref.load %arg0[%c4] : memref<8xi32, #tpu.memory_space<smem>>
    %25 = arith.index_cast %24 : i32 to index
    %c0_15 = arith.constant 0 : index
    %26 = vector.load %arg1[%25, %c0_15] : memref<16x128xf32, #tpu.memory_space<vmem>>, vector<1x128xf32>
    %cst_16 = arith.constant 0.000000e+00 : f32
    %27 = vector.broadcast %cst_16 : f32 to vector<1x128xf32>
    %28 = arith.maximumf %26, %27 : vector<1x128xf32>
    %c4_17 = arith.constant 4 : index
    %c0_18 = arith.constant 0 : index
    %29 = vector.load %arg9[%c4_17, %c0_18] : memref<8x256xf32, #tpu.memory_space<vmem>>, vector<1x128xf32>
    tpu.vector_store %arg9[%c4_17, %c0_18], %28 {strides = array<i32>} : memref<8x256xf32, #tpu.memory_space<vmem>>, vector<1x128xf32>,
    %c5 = arith.constant 5 : index
    %30 = memref.load %arg0[%c5] : memref<8xi32, #tpu.memory_space<smem>>
    %31 = arith.index_cast %30 : i32 to index
    %c0_19 = arith.constant 0 : index
    %32 = vector.load %arg1[%31, %c0_19] : memref<16x128xf32, #tpu.memory_space<vmem>>, vector<1x128xf32>
    %cst_20 = arith.constant 0.000000e+00 : f32
    %33 = vector.broadcast %cst_20 : f32 to vector<1x128xf32>
    %34 = arith.maximumf %32, %33 : vector<1x128xf32>
    %c5_21 = arith.constant 5 : index
    %c0_22 = arith.constant 0 : index
    %35 = vector.load %arg9[%c5_21, %c0_22] : memref<8x256xf32, #tpu.memory_space<vmem>>, vector<1x128xf32>
    tpu.vector_store %arg9[%c5_21, %c0_22], %34 {strides = array<i32>} : memref<8x256xf32, #tpu.memory_space<vmem>>, vector<1x128xf32>,
    %c6 = arith.constant 6 : index
    %36 = memref.load %arg0[%c6] : memref<8xi32, #tpu.memory_space<smem>>
    %37 = arith.index_cast %36 : i32 to index
    %c0_23 = arith.constant 0 : index
    %38 = vector.load %arg1[%37, %c0_23] : memref<16x128xf32, #tpu.memory_space<vmem>>, vector<1x128xf32>
    %cst_24 = arith.constant 0.000000e+00 : f32
    %39 = vector.broadcast %cst_24 : f32 to vector<1x128xf32>
    %40 = arith.maximumf %38, %39 : vector<1x128xf32>
    %c6_25 = arith.constant 6 : index
    %c0_26 = arith.constant 0 : index
    %41 = vector.load %arg9[%c6_25, %c0_26] : memref<8x256xf32, #tpu.memory_space<vmem>>, vector<1x128xf32>
    tpu.vector_store %arg9[%c6_25, %c0_26], %40 {strides = array<i32>} : memref<8x256xf32, #tpu.memory_space<vmem>>, vector<1x128xf32>,
    %c7 = arith.constant 7 : index
    %42 = memref.load %arg0[%c7] : memref<8xi32, #tpu.memory_space<smem>>
    %43 = arith.index_cast %42 : i32 to index
    %c0_27 = arith.constant 0 : index
    %44 = vector.load %arg1[%43, %c0_27] : memref<16x128xf32, #tpu.memory_space<vmem>>, vector<1x128xf32>
    %cst_28 = arith.constant 0.000000e+00 : f32
    %45 = vector.broadcast %cst_28 : f32 to vector<1x128xf32>
    %46 = arith.maximumf %44, %45 : vector<1x128xf32>
    %c7_29 = arith.constant 7 : index
    %c0_30 = arith.constant 0 : index
    %47 = vector.load %arg9[%c7_29, %c0_30] : memref<8x256xf32, #tpu.memory_space<vmem>>, vector<1x128xf32>
    tpu.vector_store %arg9[%c7_29, %c0_30], %46 {strides = array<i32>} : memref<8x256xf32, #tpu.memory_space<vmem>>, vector<1x128xf32>,
    %c0_31 = arith.constant 0 : index
    %c0_32 = arith.constant 0 : index
    %48 = vector.load %arg2[%c0_31, %c0_32] : memref<8x128xf32, #tpu.memory_space<vmem>>, vector<8x128xf32>
    %c0_33 = arith.constant 0 : index
    %c128 = arith.constant 128 : index
    %49 = vector.load %arg9[%c0_33, %c128] : memref<8x256xf32, #tpu.memory_space<vmem>>, vector<8x128xf32>
    tpu.vector_store %arg9[%c0_33, %c128], %48 {strides = array<i32>} : memref<8x256xf32, #tpu.memory_space<vmem>>, vector<8x128xf32>,
    %c0_34 = arith.constant 0 : index
    %c0_35 = arith.constant 0 : index
    %50 = vector.load %arg9[%c0_34, %c0_35] : memref<8x256xf32, #tpu.memory_space<vmem>>, vector<8x256xf32>
    %c0_36 = arith.constant 0 : index
    %c0_37 = arith.constant 0 : index
    %51 = vector.load %arg3[%c0_36, %c0_37] : memref<256x512xf32, #tpu.memory_space<vmem>>, vector<256x512xf32>
    %cst_38 = arith.constant dense<0.000000e+00> : vector<8x512xf32>
    %52 = tpu.matmul %50, %51, %cst_38 {dimension_numbers = #tpu.dot_dimension_numbers<[1], [0], [0], [1], [0, 0, 1, 1], [], []>} : vector<8x256xf32>, vector<256x512xf32>, vector<8x512xf32> -> vector<8x512xf32>
    %c0_39 = arith.constant 0 : index
    %c0_40 = arith.constant 0 : index
    %53 = vector.load %arg4[%c0_39, %c0_40] : memref<1x512xf32, #tpu.memory_space<vmem>>, vector<1x512xf32>
    %54 = vector.broadcast %53 : vector<1x512xf32> to vector<8x512xf32>
    %55 = arith.addf %52, %54 : vector<8x512xf32>
    %56 = vector.extract_strided_slice %55 {offsets = [0, 0], sizes = [8, 128], strides = [1, 1]} : vector<8x512xf32> to vector<8x128xf32>
    %57 = arith.negf %56 : vector<8x128xf32>
    %58 = math.exp %57 : vector<8x128xf32>
    %cst_41 = arith.constant 1.000000e+00 : f32
    %59 = vector.broadcast %cst_41 : f32 to vector<8x128xf32>
    %60 = arith.addf %59, %58 : vector<8x128xf32>
    %61 = arith.divf %59, %60 : vector<8x128xf32>
    %62 = vector.extract_strided_slice %55 {offsets = [0, 128], sizes = [8, 128], strides = [1, 1]} : vector<8x512xf32> to vector<8x128xf32>
    %63 = arith.negf %62 : vector<8x128xf32>
    %64 = math.exp %63 : vector<8x128xf32>
    %cst_42 = arith.constant 1.000000e+00 : f32
    %65 = vector.broadcast %cst_42 : f32 to vector<8x128xf32>
    %66 = arith.addf %65, %64 : vector<8x128xf32>
    %67 = arith.divf %65, %66 : vector<8x128xf32>
    %68 = vector.extract_strided_slice %55 {offsets = [0, 256], sizes = [8, 128], strides = [1, 1]} : vector<8x512xf32> to vector<8x128xf32>
    %69 = vector.extract_strided_slice %55 {offsets = [0, 384], sizes = [8, 128], strides = [1, 1]} : vector<8x512xf32> to vector<8x128xf32>
    %70 = arith.mulf %61, %69 : vector<8x128xf32>
    %71 = arith.addf %68, %70 : vector<8x128xf32>
    %72 = math.tanh %71 : vector<8x128xf32>
    %c0_43 = arith.constant 0 : index
    %c0_44 = arith.constant 0 : index
    %73 = vector.load %arg2[%c0_43, %c0_44] : memref<8x128xf32, #tpu.memory_space<vmem>>, vector<8x128xf32>
    %cst_45 = arith.constant 1.000000e+00 : f32
    %74 = vector.broadcast %cst_45 : f32 to vector<8x128xf32>
    %75 = arith.subf %74, %67 : vector<8x128xf32>
    %76 = arith.mulf %75, %72 : vector<8x128xf32>
    %77 = arith.mulf %67, %73 : vector<8x128xf32>
    %78 = arith.addf %76, %77 : vector<8x128xf32>
    %c0_46 = arith.constant 0 : index
    %c0_47 = arith.constant 0 : index
    %79 = vector.load %arg5[%c0_46, %c0_47] : memref<128x128xf32, #tpu.memory_space<vmem>>, vector<128x128xf32>
    %cst_48 = arith.constant dense<0.000000e+00> : vector<8x128xf32>
    %80 = tpu.matmul %78, %79, %cst_48 {dimension_numbers = #tpu.dot_dimension_numbers<[1], [0], [0], [1], [0, 0, 1, 1], [], []>} : vector<8x128xf32>, vector<128x128xf32>, vector<8x128xf32> -> vector<8x128xf32>
    %c0_49 = arith.constant 0 : index
    %c0_50 = arith.constant 0 : index
    %81 = vector.load %arg6[%c0_49, %c0_50] : memref<1x128xf32, #tpu.memory_space<vmem>>, vector<1x128xf32>
    %82 = vector.broadcast %81 : vector<1x128xf32> to vector<8x128xf32>
    %83 = arith.addf %80, %82 : vector<8x128xf32>
    %cst_51 = arith.constant dense<0xFF800000> : vector<8xf32>
    %84 = vector.multi_reduction <maximumf>, %83, %cst_51 [1] : vector<8x128xf32> to vector<8xf32>
    %85 = vector.shape_cast %84 : vector<8xf32> to vector<8x1xf32>
    %86 = vector.broadcast %85 : vector<8x1xf32> to vector<8x128xf32>
    %87 = arith.subf %83, %86 : vector<8x128xf32>
    %88 = math.exp %87 : vector<8x128xf32>
    %cst_52 = arith.constant dense<0.000000e+00> : vector<8xf32>
    %89 = vector.multi_reduction <add>, %88, %cst_52 [1] : vector<8x128xf32> to vector<8xf32>
    %90 = vector.shape_cast %89 : vector<8xf32> to vector<8x1xf32>
    %91 = math.log %90 : vector<8x1xf32>
    %92 = vector.broadcast %91 : vector<8x1xf32> to vector<8x128xf32>
    %93 = arith.subf %87, %92 : vector<8x128xf32>
    %c0_53 = arith.constant 0 : index
    %c0_54 = arith.constant 0 : index
    %94 = vector.load %arg7[%c0_53, %c0_54] : memref<8x128xf32, #tpu.memory_space<vmem>>, vector<8x128xf32>
    tpu.vector_store %arg7[%c0_53, %c0_54], %93 {strides = array<i32>} : memref<8x128xf32, #tpu.memory_space<vmem>>, vector<8x128xf32>,
    %c0_55 = arith.constant 0 : index
    %c0_56 = arith.constant 0 : index
    %95 = vector.load %arg8[%c0_55, %c0_56] : memref<8x128xf32, #tpu.memory_space<vmem>>, vector<8x128xf32>
    tpu.vector_store %arg8[%c0_55, %c0_56], %78 {strides = array<i32>} : memref<8x128xf32, #tpu.memory_space<vmem>>, vector<8x128xf32>,
    return
  }
}

</mosaic_0001>

<bundles_post_ra>
// kernel: tpu_custom_call.1
= control target key start
LH: loop header
LB: loop body
LE: loop exit
PB: predicated region body
PF: predicated region fallthrough
CT: control target
= control target key end

     0   :  { %14 = vsyncpa [#allocation6], 0  ;;  %s1187_s0 = inlined_call_operand.hbm [shape: s32[8], index: 0, kind: input, shape index: {}]   ;;  %s1188_s1 = inlined_call_operand.hbm [shape: f32[16,128], index: 1, kind: input, shape index: {}]   ;;  %s1189_s2 = inlined_call_operand.hbm [shape: f32[8,128], index: 2, kind: input, shape index: {}]   ;;  %s1190_s3 = inlined_call_operand.hbm [shape: f32[256,512], index: 3, kind: input, shape index: {}]   ;;  %s1191_s4 = inlined_call_operand.vmem [shape: f32[1,512], index: 4, kind: input, shape index: {}]   ;;  %s1192_s5 = inlined_call_operand.hbm [shape: f32[128,128], index: 5, kind: input, shape index: {}]   ;;  %s1193_s6 = inlined_call_operand.vmem [shape: f32[1,128], index: 6, kind: input, shape index: {}]   ;;  %s1194_s7 = inlined_call_operand.hbm [shape: f32[8,128], index: 7, kind: output, shape index: {0}]   ;;  %s1195_s8 = inlined_call_operand.hbm [shape: f32[8,128], index: 8, kind: output, shape index: {1}]  }
   0x1   :  { %15 = vsyncpa [#allocation4], 0 }
   0x2   :  { %16 = vsyncpa [#allocation9], 0 }
   0x3   :  { %17 = vsyncpa [#allocation12], 0 }
   0x4   :  { %18 = vsyncpa [#allocation5], 0 }
   0x5   :  { %19 = vsyncpa [#allocation15], 0  ;;  %s991_s27 = smov [#allocation8]   ;;  %s992_s29 = smov [#allocation7]  }
   0x6   :  { %s46_s28 = sshll.u32 %s991_s27, 4  ;;  %s33_s30 = sshll.u32 %s992_s29, 4  ;;  %s47_s28 = int_to_ptr.vmem [resolvable:$true] %s46_s28  ;;  %s34_s30 = int_to_ptr.vmem [resolvable:$true] %s33_s30 }
   0x7   :  { %s837_s11 = scalar_lea.hbm %s1189_s2, 128 }
   0x8   :  { %p838_p0 = scmp.ne.s32.totalorder %s1189_s2, %s837_s11  ;;  %p841_p1 = scmp.lt.u32.totalorder %s837_s11, %s1189_s2 }
   0xa   :  { %p843_p2 = pnand %p841_p1, %p838_p0 }
   0xc   :  { %846 = shalt.err (!%p843_p2)
}
   0xd   :  { %s847_s16 = scalar_lea.vmem %s47_s28, 128  ;;  %p852_p4 = scmp.lt.s32.totalorder %s47_s28, %s47_s28 }
   0xe   :  { %p848_p3 = scmp.ne.s32.totalorder %s47_s28, %s847_s16  ;;  %p853_p5 = scmp.lt.s32.totalorder %s847_s16, %s847_s16 }
  0x10   :  { %p854_p6 = por %p853_p5, %p852_p4 }
  0x12   :  { %p855_p7 = pnand %p854_p6, %p848_p3 }
  0x14   :  { %858 = shalt.err (!%p855_p7)
}
  0x15   :  { %49 = dma.hbm_to_vmem [thread:$0]  %s1189_s2, 128, %s47_s28, [#allocation9]  }
  0x16   :  { %s859_s21 = scalar_lea.hbm %s1187_s0, 16 }
  0x17   :  { %p860_p8 = scmp.ne.s32.totalorder %s1187_s0, %s859_s21  ;;  %p863_p9 = scmp.lt.u32.totalorder %s859_s21, %s1187_s0 }
  0x19   :  { %p865_p10 = pnand %p863_p9, %p860_p8 }
  0x1b   :  { %868 = shalt.err (!%p865_p10)
}
  0x1c   :  { %s993_s26 = smov [#allocation3]   ;;  %s869_s9 = scalar_lea.hbm %s1188_s1, 256 }
  0x1d   :  { %27 = dma.hbm_to_smem %s1187_s0, 16, %s993_s26, [#allocation6]  }
  0x1e   :  { %p870_p11 = scmp.ne.s32.totalorder %s1188_s1, %s869_s9  ;;  %p873_p12 = scmp.lt.u32.totalorder %s869_s9, %s1188_s1 }
  0x20   :  { %p875_p13 = pnand %p873_p12, %p870_p11 }
  0x22   :  { %878 = shalt.err (!%p875_p13)
}
  0x23   :  { %s879_s14 = scalar_lea.vmem %s34_s30, 256  ;;  %p884_p1 = scmp.lt.s32.totalorder %s34_s30, %s34_s30 }
  0x24   :  { %p880_p0 = scmp.ne.s32.totalorder %s34_s30, %s879_s14  ;;  %p885_p2 = scmp.lt.s32.totalorder %s879_s14, %s879_s14 }
  0x26   :  { %p886_p3 = por %p885_p2, %p884_p1 }
  0x28   :  { %p887_p4 = pnand %p886_p3, %p880_p0 }
  0x2a   :  { %890 = shalt.err (!%p887_p4)
}
  0x2b   :  { %s994_s0 = smov 128   ;;  %s995_s15 = smov 8  }
  0x2c   :  { %39 = dma.hbm_to_vmem [thread:$0]  %s1188_s1, 256, %s34_s30, [#allocation4], %s994_s0, %s994_s0, %s995_s15  }
  0x2d   :  { %s996_s18 = smov [#allocation10]   ;;  %s891_s22 = scalar_lea.hbm %s1190_s3, 16384 }
  0x2e   :  { %s55_s19 = sshll.u32 %s996_s18, 4  ;;  %p892_p5 = scmp.ne.s32.totalorder %s1190_s3, %s891_s22  ;;  %s56_s19 = int_to_ptr.vmem [resolvable:$true] %s55_s19 }
  0x2f   :  { %p895_p6 = scmp.lt.u32.totalorder %s891_s22, %s1190_s3 }
  0x31   :  { %p897_p7 = pnand %p895_p6, %p892_p5 }
  0x33   :  { %900 = shalt.err (!%p897_p7)
}
  0x34   :  { %s901_s27 = scalar_lea.vmem %s56_s19, 16384  ;;  %p906_p9 = scmp.lt.s32.totalorder %s56_s19, %s56_s19 }
  0x35   :  { %p902_p8 = scmp.ne.s32.totalorder %s56_s19, %s901_s27  ;;  %p907_p10 = scmp.lt.s32.totalorder %s901_s27, %s901_s27 }
  0x37   :  { %p908_p11 = por %p907_p10, %p906_p9 }
  0x39   :  { %p909_p12 = pnand %p908_p11, %p902_p8 }
  0x3b   :  { %912 = shalt.err (!%p909_p12)
}
  0x3c   :  { %s997_s1 = smov 512   ;;  %s998_s30 = smov 32  }
  0x3d   :  { %61 = dma.hbm_to_vmem [thread:$0]  %s1190_s3, 16384, %s56_s19, [#allocation9], %s997_s1, %s997_s1, %s998_s30  }
  0x3e   :  { %s999_s28 = smov [#allocation11]   ;;  %s913_s12 = scalar_lea.hbm %s1192_s5, 2048 }
  0x3f   :  { %s69_s9 = sshll.u32 %s999_s28, 4  ;;  %p914_p13 = scmp.ne.s32.totalorder %s1192_s5, %s913_s12  ;;  %s70_s9 = int_to_ptr.vmem [resolvable:$true] %s69_s9 }
  0x40   :  { %p917_p0 = scmp.lt.u32.totalorder %s913_s12, %s1192_s5 }
  0x42   :  { %p919_p1 = pnand %p917_p0, %p914_p13 }
  0x44   :  { %922 = shalt.err (!%p919_p1)
}
  0x45   :  { %s923_s18 = scalar_lea.vmem %s70_s9, 2048  ;;  %p928_p3 = scmp.lt.s32.totalorder %s70_s9, %s70_s9 }
  0x46   :  { %p924_p2 = scmp.ne.s32.totalorder %s70_s9, %s923_s18  ;;  %p929_p4 = scmp.lt.s32.totalorder %s923_s18, %s923_s18 }
  0x48   :  { %p930_p5 = por %p929_p4, %p928_p3 }
  0x4a   :  { %p931_p6 = pnand %p930_p5, %p924_p2 }
  0x4c   :  { %934 = shalt.err (!%p931_p6)
}
  0x4d   :  { %75 = dma.hbm_to_vmem [thread:$0]  %s1192_s5, 2048, %s70_s9, [#allocation12], %s994_s0, %s994_s0, %s995_s15  }
  0x4e   :  { %979 = dma.done.wait [#allocation6], 16  }
  0x4f   :  { %980 = vsyncadd [#allocation6], 4294967280 }
  0x50   :  { %981 = dma.done.wait [#allocation4], 256  }
  0x51   :  { %982 = vsyncadd [#allocation4], 4294967040 }
  0x52   :  { %983 = dma.done.wait [#allocation9], 16512  }
  0x53   :  { %984 = vsyncadd [#allocation9], 4294950784 }
  0x54   :  { %985 = dma.done.wait [#allocation12], 2048  }
  0x55   :  { %986 = vsyncadd [#allocation12], 4294965248 }
  0x56   :  { %93 = sfence }
  0x57   :  { %v139_v0 = vld [vmem:[#allocation10 + $0x8] sm:$0xff]  ;;  %v138_v2 = vld [vmem:[#allocation10] sm:$0xff]  ;;  %v141_v21 = vld [vmem:[#allocation10 + $0x18] sm:$0xff]  ;;  %s1116_s5 = sld [smem:[#allocation3]]  ;;  %s1118_s0 = sld [smem:[#allocation3 + $0x1]]  ;;  %vm1001_vm0 = vmmov 0  }
  0x58   :  { %v143_v1 = vld [vmem:[#allocation10 + $0x28] sm:$0xff]  ;;  %v142_v4 = vld [vmem:[#allocation10 + $0x20] sm:$0xff]  ;;  %v145_v25 = vld [vmem:[#allocation10 + $0x38] sm:$0xff]  ;;  %s1120_s15 = sld [smem:[#allocation3 + $0x2]]  ;;  %s1122_s20 = sld [smem:[#allocation3 + $0x3]] }
  0x59   :  { %v657_v3 = vpack.c.bf16 %v143_v1, %v139_v0  ;;  %v147_v5 = vld [vmem:[#allocation10 + $0x48] sm:$0xff]  ;;  %v659_v7 = vpack.c.bf16 %v142_v4, %v138_v2  ;;  %v146_v9 = vld [vmem:[#allocation10 + $0x40] sm:$0xff]  ;;  %v721_v27 = vpack.c.bf16 %v145_v25, %v141_v21  ;;  %v140_v28 = vld [vmem:[#allocation10 + $0x10] sm:$0xff]  ;;  %s1124_s21 = sld [smem:[#allocation3 + $0x4]]  ;;  %s1126_s22 = sld [smem:[#allocation3 + $0x5]] }
  0x5a   :  { %v151_v6 = vld [vmem:[#allocation10 + $0x68] sm:$0xff]  ;;  %v150_v10 = vld [vmem:[#allocation10 + $0x60] sm:$0xff]  ;;  %v144_v29 = vld [vmem:[#allocation10 + $0x30] sm:$0xff]  ;;  %s1128_s23 = sld [smem:[#allocation3 + $0x6]]  ;;  %s1130_s24 = sld [smem:[#allocation3 + $0x7]] }
  0x5b   :  { %v661_v8 = vpack.c.bf16 %v151_v6, %v147_v5  ;;  %v155_v11 = vld [vmem:[#allocation10 + $0x88] sm:$0xff]  ;;  %658 = vmatprep.subr.bf16.mxu0 %v657_v3  ;;  %v663_v13 = vpack.c.bf16 %v150_v10, %v146_v9  ;;  %v154_v15 = vld [vmem:[#allocation10 + $0x80] sm:$0xff]  ;;  %v723_v30 = vpack.c.bf16 %v144_v29, %v140_v28  ;;  %v149_v31 = vld [vmem:[#allocation10 + $0x58] sm:$0xff]  ;;  %722 = vmatprep.subr.bf16.mxu1 %v721_v27  ;;  %s1003_s12 = smov [#allocation14]  }
  0x5c   :  { %v159_v12 = vld [vmem:[#allocation10 + $0xa8] sm:$0xff]  ;;  %660 = vmatpush1.bf16.msra.mxu0 %v659_v7  ;;  %v158_v16 = vld [vmem:[#allocation10 + $0xa0] sm:$0xff]  ;;  %v153_v32 = vld [vmem:[#allocation10 + $0x78] sm:$0xff]  ;;  %s571_s13 = sshll.u32 %s1003_s12, 4  ;;  %s572_s13 = int_to_ptr.vmem [resolvable:$true] %s571_s13 }
  0x5d   :  { %662 = vmatprep.subr.bf16.mxu0 %v661_v8  ;;  %v665_v14 = vpack.c.bf16 %v159_v12, %v155_v11  ;;  %v163_v17 = vld [vmem:[#allocation10 + $0xc8] sm:$0xff]  ;;  %v667_v19 = vpack.c.bf16 %v158_v16, %v154_v15  ;;  %v162_v20 = vld [vmem:[#allocation10 + $0xc0] sm:$0xff]  ;;  %v725_v35 = vpack.c.bf16 %v153_v32, %v149_v31  ;;  %v148_v36 = vld [vmem:[#allocation10 + $0x50] sm:$0xff]  ;;  %724 = vmatpush1.bf16.msra.mxu1 %v723_v30  ;;  %s95_s25 = scalar_lea.vmem [#allocation7], %s1116_s5  ;;  %s100_s26 = scalar_lea.vmem [#allocation7], %s1118_s0 }
  0x5e   :  { %v167_v18 = vld [vmem:[#allocation10 + $0xe8] sm:$0xff]  ;;  %v166_v23 = vld [vmem:[#allocation10 + $0xe0] sm:$0xff]  ;;  %v152_v40 = vld [vmem:[#allocation10 + $0x70] sm:$0xff]  ;;  %s105_s27 = scalar_lea.vmem [#allocation7], %s1120_s15  ;;  %s110_s1 = scalar_lea.vmem [#allocation7], %s1122_s20 }
  0x5f   :  { %v669_v22 = vpack.c.bf16 %v167_v18, %v163_v17  ;;  %v171_v24 = vld [vmem:[#allocation10 + $0x108] sm:$0xff]  ;;  %v671_v33 = vpack.c.bf16 %v166_v23, %v162_v20  ;;  %v170_v34 = vld [vmem:[#allocation10 + $0x100] sm:$0xff]  ;;  %726 = vmatprep.subr.bf16.mxu1 %v725_v35  ;;  %v727_v42 = vpack.c.bf16 %v152_v40, %v148_v36  ;;  %v157_v43 = vld [vmem:[#allocation10 + $0x98] sm:$0xff]  ;;  %s115_s30 = scalar_lea.vmem [#allocation7], %s1124_s21  ;;  %s120_s29 = scalar_lea.vmem [#allocation7], %s1126_s22 }
  0x60   :  { %664 = vmatpush1.bf16.msra.mxu0 %v663_v13  ;;  %v175_v26 = vld [vmem:[#allocation10 + $0x128] sm:$0xff]  ;;  %v174_v38 = vld [vmem:[#allocation10 + $0x120] sm:$0xff]  ;;  %v161_v44 = vld [vmem:[#allocation10 + $0xb8] sm:$0xff]  ;;  %s125_s2 = scalar_lea.vmem [#allocation7], %s1128_s23  ;;  %s130_s28 = scalar_lea.vmem [#allocation7], %s1130_s24 }
  0x61   :  { %666 = vmatprep.subr.bf16.mxu0 %v665_v14  ;;  %v673_v37 = vpack.c.bf16 %v175_v26, %v171_v24  ;;  %v179_v39 = vld [vmem:[#allocation10 + $0x148] sm:$0xff]  ;;  %v729_v45 = vpack.c.bf16 %v161_v44, %v157_v43  ;;  %v156_v46 = vld [vmem:[#allocation10 + $0x90] sm:$0xff]  ;;  %v675_v48 = vpack.c.bf16 %v174_v38, %v170_v34  ;;  %v178_v49 = vld [vmem:[#allocation10 + $0x140] sm:$0xff]  ;;  %728 = vmatpush1.bf16.msra.mxu1 %v727_v42  ;;  %s935_s14 = scalar_lea.vmem %s572_s13, 128  ;;  %p940_p8 = scmp.lt.s32.totalorder %s572_s13, %s572_s13 }
  0x62   :  { %v183_v41 = vld [vmem:[#allocation10 + $0x168] sm:$0xff]  ;;  %v160_v47 = vld [vmem:[#allocation10 + $0xb0] sm:$0xff]  ;;  %v165_v50 = vld [vmem:[#allocation10 + $0xd8] sm:$0xff]  ;;  %p936_p7 = scmp.ne.s32.totalorder %s572_s13, %s935_s14  ;;  %p941_p9 = scmp.lt.s32.totalorder %s935_s14, %s935_s14 }
  0x63   :  { %v677_v51 = vpack.c.bf16 %v183_v41, %v179_v39  ;;  %v182_v52 = vld [vmem:[#allocation10 + $0x160] sm:$0xff]  ;;  %v187_v53 = vld [vmem:[#allocation10 + $0x188] sm:$0xff]  ;;  %v731_v54 = vpack.c.bf16 %v160_v47, %v156_v46  ;;  %v169_v55 = vld [vmem:[#allocation10 + $0xf8] sm:$0xff]  ;;  %730 = vmatprep.subr.bf16.mxu1 %v729_v45 }
  0x64   :  { %668 = vmatpush1.bf16.msra.mxu0 %v667_v19  ;;  %v191_v56 = vld [vmem:[#allocation10 + $0x1a8] sm:$0xff]  ;;  %v733_v57 = vpack.c.bf16 %v169_v55, %v165_v50  ;;  %v164_v58 = vld [vmem:[#allocation10 + $0xd0] sm:$0xff]  ;;  %v173_v60 = vld [vmem:[#allocation10 + $0x118] sm:$0xff]  ;;  %v679_v62 = vpack.c.bf16 %v182_v52, %v178_v49  ;;  %p942_p10 = por %p941_p9, %p940_p8 }
  0x65   :  { %670 = vmatprep.subr.bf16.mxu0 %v669_v22  ;;  %v168_v59 = vld [vmem:[#allocation10 + $0xf0] sm:$0xff]  ;;  %v177_v61 = vld [vmem:[#allocation10 + $0x138] sm:$0xff]  ;;  %v681_v63 = vpack.c.bf16 %v191_v56, %v187_v53  ;;  %v186_v0 = vld [vmem:[#allocation10 + $0x180] sm:$0xff]  ;;  %732 = vmatpush1.bf16.msra.mxu1 %v731_v54 }
  0x66   :  { %v190_v1 = vld [vmem:[#allocation10 + $0x1a0] sm:$0xff]  ;;  %v195_v2 = vld [vmem:[#allocation10 + $0x1c8] sm:$0xff]  ;;  %v735_v3 = vpack.c.bf16 %v168_v59, %v164_v58  ;;  %734 = vmatprep.subr.bf16.mxu1 %v733_v57  ;;  %v737_v5 = vpack.c.bf16 %v177_v61, %v173_v60  ;;  %v172_v6 = vld [vmem:[#allocation10 + $0x110] sm:$0xff]  ;;  %p943_p11 = pnand %p942_p10, %p936_p7 }
  0x67   :  { %v199_v4 = vld [vmem:[#allocation10 + $0x1e8] sm:$0xff]  ;;  %v176_v7 = vld [vmem:[#allocation10 + $0x130] sm:$0xff]  ;;  %v181_v8 = vld [vmem:[#allocation10 + $0x158] sm:$0xff]  ;;  %v683_v10 = vpack.c.bf16 %v190_v1, %v186_v0 }
  0x68   :  { %672 = vmatpush1.bf16.msra.mxu0 %v671_v33  ;;  %v185_v9 = vld [vmem:[#allocation10 + $0x178] sm:$0xff]  ;;  %v685_v11 = vpack.c.bf16 %v199_v4, %v195_v2  ;;  %v194_v12 = vld [vmem:[#allocation10 + $0x1c0] sm:$0xff]  ;;  %v203_v14 = vld [vmem:[#allocation10 + $0x208] sm:$0xff]  ;;  %v739_v15 = vpack.c.bf16 %v176_v7, %v172_v6 }
  0x69   :  { %674 = vmatprep.subr.bf16.mxu0 %v673_v37  ;;  %v198_v13 = vld [vmem:[#allocation10 + $0x1e0] sm:$0xff]  ;;  %736 = vmatpush1.bf16.msra.mxu1 %v735_v3  ;;  %v207_v16 = vld [vmem:[#allocation10 + $0x228] sm:$0xff]  ;;  %v741_v17 = vpack.c.bf16 %v185_v9, %v181_v8  ;;  %v180_v18 = vld [vmem:[#allocation10 + $0x150] sm:$0xff] }
  0x6a   :  { %738 = vmatprep.subr.bf16.mxu1 %v737_v5  ;;  %v184_v19 = vld [vmem:[#allocation10 + $0x170] sm:$0xff]  ;;  %v189_v20 = vld [vmem:[#allocation10 + $0x198] sm:$0xff]  ;;  %v687_v22 = vpack.c.bf16 %v198_v13, %v194_v12  ;;  %v689_v23 = vpack.c.bf16 %v207_v16, %v203_v14  ;;  %v202_v24 = vld [vmem:[#allocation10 + $0x200] sm:$0xff] }
  0x6b   :  { %v193_v21 = vld [vmem:[#allocation10 + $0x1b8] sm:$0xff]  ;;  %v206_v25 = vld [vmem:[#allocation10 + $0x220] sm:$0xff]  ;;  %v211_v26 = vld [vmem:[#allocation10 + $0x248] sm:$0xff]  ;;  %v743_v27 = vpack.c.bf16 %v184_v19, %v180_v18 }
  0x6c   :  { %676 = vmatpush1.bf16.msra.mxu0 %v675_v48  ;;  %v215_v28 = vld [vmem:[#allocation10 + $0x268] sm:$0xff]  ;;  %v745_v29 = vpack.c.bf16 %v193_v21, %v189_v20  ;;  %v188_v30 = vld [vmem:[#allocation10 + $0x190] sm:$0xff]  ;;  %v197_v32 = vld [vmem:[#allocation10 + $0x1d8] sm:$0xff]  ;;  %v691_v34 = vpack.c.bf16 %v206_v25, %v202_v24 }
  0x6d   :  { %678 = vmatprep.subr.bf16.mxu0 %v677_v51  ;;  %740 = vmatpush1.bf16.msra.mxu1 %v739_v15  ;;  %v192_v31 = vld [vmem:[#allocation10 + $0x1b0] sm:$0xff]  ;;  %v201_v33 = vld [vmem:[#allocation10 + $0x1f8] sm:$0xff]  ;;  %v210_v35 = vld [vmem:[#allocation10 + $0x240] sm:$0xff]  ;;  %v693_v38 = vpack.c.bf16 %v215_v28, %v211_v26 }
  0x6e   :  { %742 = vmatprep.subr.bf16.mxu1 %v741_v17  ;;  %v214_v36 = vld [vmem:[#allocation10 + $0x260] sm:$0xff]  ;;  %v1132_v37 = vld [vmem:[#allocation10 + $0x288] sm:$0xff]  ;;  %v747_v40 = vpack.c.bf16 %v192_v31, %v188_v30  ;;  %v196_v41 = vld [vmem:[#allocation10 + $0x1d0] sm:$0xff]  ;;  %v749_v43 = vpack.c.bf16 %v201_v33, %v197_v32 }
  0x6f   :  { %v223_v39 = vld [vmem:[#allocation10 + $0x2a8] sm:$0xff]  ;;  %v200_v42 = vld [vmem:[#allocation10 + $0x1f0] sm:$0xff]  ;;  %v1134_v44 = vld [vmem:[#allocation10 + $0x218] sm:$0xff]  ;;  %v695_v52 = vpack.c.bf16 %v214_v36, %v210_v35 }
  0x70   :  { %680 = vmatpush1.bf16.msra.mxu0 %v679_v62  ;;  %v209_v45 = vld [vmem:[#allocation10 + $0x238] sm:$0xff]  ;;  %v1138_v47 = vld [vmem:[#allocation10 + $0x280] sm:$0xff]  ;;  %v96_v49 = vld [vmem:[%s95_s25] sm:$0x1]  ;;  %v697_v60 = vpack.c.bf16 %v223_v39, %v1132_v37  ;;  %v751_v61 = vpack.c.bf16 %v200_v42, %v196_v41 }
  0x71   :  { %682 = vmatprep.subr.bf16.mxu0 %v681_v63  ;;  %744 = vmatpush1.bf16.msra.mxu1 %v743_v27  ;;  %v1136_v46 = vld [vmem:[#allocation8] sm:$0xff]  ;;  %v1140_v48 = vld [vmem:[#allocation10 + $0x2a0] sm:$0xff]  ;;  %v101_v50 = vld [vmem:[%s100_s26] sm:$0x1]  ;;  %v97_v56 = vmax.f32 %v96_v49, 0.0  ;;  %v753_v2 = vpack.c.bf16 %v209_v45, %v1134_v44 }
  0x72   :  { %746 = vmatprep.subr.bf16.mxu1 %v745_v29  ;;  %352 = vmatprep.mubr.f32.mxu0 %v1136_v46  ;;  %v106_v51 = vld [vmem:[%s105_s27] sm:$0x1]  ;;  %v227_v53 = vld [vmem:[#allocation10 + $0x2c8] sm:$0xff]  ;;  %v102_v57 = vmax.f32 %v101_v50, 0.0  ;;  %v213_v7 = vld [vmem:[#allocation10 + $0x258] sm:$0xff] }
  0x73   :  { %423 = vmatprep.mubr.f32.mxu1 %v1136_v46  ;;  %v231_v54 = vld [vmem:[#allocation10 + $0x2e8] sm:$0xff]  ;;  %v204_v55 = vld [vmem:[#allocation10 + $0x210] sm:$0xff]  ;;  %v107_v58 = vmax.f32 %v106_v51, 0.0  ;;  %98 = vst [vmem:[#allocation2] sm:$0x1] %v97_v56  ;;  %v217_v8 = vld [vmem:[#allocation10 + $0x278] sm:$0xff] }
  0x74   :  { %684 = vmatpush1.bf16.msra.mxu0 %v683_v10  ;;  %v111_v59 = vld [vmem:[%s110_s1] sm:$0x1]  ;;  %103 = vst [vmem:[#allocation2 + $0x1] sm:$0x1] %v102_v57  ;;  %v701_v12 = vpack.c.bf16 %v231_v54, %v227_v53  ;;  %v226_v13 = vld [vmem:[#allocation10 + $0x2c0] sm:$0xff]  ;;  %v235_v15 = vld [vmem:[#allocation10 + $0x308] sm:$0xff]  ;;  %v757_v18 = vpack.c.bf16 %v217_v8, %v213_v7 }
  0x75   :  { %686 = vmatprep.subr.bf16.mxu0 %v685_v11  ;;  %748 = vmatpush1.bf16.msra.mxu1 %v747_v40  ;;  %v208_v62 = vld [vmem:[#allocation10 + $0x230] sm:$0xff]  ;;  %v112_v63 = vmax.f32 %v111_v59, 0.0  ;;  %108 = vst [vmem:[#allocation2 + $0x2] sm:$0x1] %v107_v58  ;;  %v699_v11 = vpack.c.bf16 %v1140_v48, %v1138_v47  ;;  %v230_v14 = vld [vmem:[#allocation10 + $0x2e0] sm:$0xff]  ;;  %v239_v17 = vld [vmem:[#allocation10 + $0x328] sm:$0xff] }
  0x76   :  { %v116_v0 = vld [vmem:[%s115_s30] sm:$0x1]  ;;  %750 = vmatprep.subr.bf16.mxu1 %v749_v43  ;;  %v755_v16 = vpack.c.bf16 %v208_v62, %v204_v55  ;;  %v221_v21 = vld [vmem:[#allocation10 + $0x298] sm:$0xff]  ;;  %v705_v24 = vpack.c.bf16 %v239_v17, %v235_v15  ;;  %v234_v25 = vld [vmem:[#allocation10 + $0x300] sm:$0xff] }
  0x77   :  { %v121_v1 = vld [vmem:[%s120_s29] sm:$0x1]  ;;  %v117_v3 = vmax.f32 %v116_v0, 0.0  ;;  %113 = vst [vmem:[#allocation2 + $0x3] sm:$0x1] %v112_v63  ;;  %v238_v26 = vld [vmem:[#allocation10 + $0x320] sm:$0xff] }
  0x78   :  { %688 = vmatpush1.bf16.msra.mxu0 %v687_v22  ;;  %v122_v4 = vmax.f32 %v121_v1, 0.0  ;;  %v126_v5 = vld [vmem:[%s125_s2] sm:$0x1]  ;;  %v225_v22 = vld [vmem:[#allocation10 + $0x2b8] sm:$0xff]  ;;  %v243_v27 = vld [vmem:[#allocation10 + $0x348] sm:$0xff]  ;;  %v707_v35 = vpack.c.bf16 %v238_v26, %v234_v25 }
  0x79   :  { %690 = vmatprep.subr.bf16.mxu0 %v689_v23  ;;  %v131_v6 = vld [vmem:[%s130_s28] sm:$0x1]  ;;  %v127_v9 = vmax.f32 %v126_v5, 0.0  ;;  %118 = vst [vmem:[#allocation2 + $0x4] sm:$0x1] %v117_v3  ;;  %752 = vmatpush1.bf16.msra.mxu1 %v751_v61  ;;  %v703_v23 = vpack.c.bf16 %v230_v14, %v226_v13  ;;  %v247_v29 = vld [vmem:[#allocation10 + $0x368] sm:$0xff]  ;;  %v761_v30 = vpack.c.bf16 %v225_v22, %v221_v21 }
  0x7a   :  { %v132_v10 = vmax.f32 %v131_v6, 0.0  ;;  %123 = vst [vmem:[#allocation2 + $0x5] sm:$0x1] %v122_v4  ;;  %754 = vmatprep.subr.bf16.mxu1 %v753_v2  ;;  %v212_v19 = vld [vmem:[#allocation10 + $0x250] sm:$0xff]  ;;  %v229_v33 = vld [vmem:[#allocation10 + $0x2d8] sm:$0xff]  ;;  %v709_v36 = vpack.c.bf16 %v247_v29, %v243_v27  ;;  %v242_v37 = vld [vmem:[#allocation10 + $0x340] sm:$0xff] }
  0x7b   :  { %128 = vst [vmem:[#allocation2 + $0x6] sm:$0x1] %v127_v9  ;;  %v216_v20 = vld [vmem:[#allocation10 + $0x270] sm:$0xff]  ;;  %v251_v39 = vld [vmem:[#allocation10 + $0x388] sm:$0xff]  ;;  %v237_v45 = vld [vmem:[#allocation10 + $0x318] sm:$0xff]  ;;  %v1000_v22 = vmov 0.0|0.0  }
  0x7c   :  { %692 = vmatpush1.bf16.msra.mxu0 %v691_v34  ;;  %133 = vst [vmem:[#allocation2 + $0x7] sm:$0x1] %v132_v10  ;;  %v759_v28 = vpack.c.bf16 %v216_v20, %v212_v19  ;;  %v220_v31 = vld [vmem:[#allocation10 + $0x290] sm:$0xff]  ;;  %v233_v34 = vld [vmem:[#allocation10 + $0x2f8] sm:$0xff]  ;;  %v255_v41 = vld [vmem:[#allocation10 + $0x3a8] sm:$0xff] }
  0x7d   :  { %694 = vmatprep.subr.bf16.mxu0 %v693_v38  ;;  %756 = vmatpush1.bf16.msra.mxu1 %v755_v16  ;;  %v224_v32 = vld [vmem:[#allocation10 + $0x2b0] sm:$0xff]  ;;  %v246_v38 = vld [vmem:[#allocation10 + $0x360] sm:$0xff]  ;;  %v765_v42 = vpack.c.bf16 %v233_v34, %v229_v33  ;;  %v241_v47 = vld [vmem:[#allocation10 + $0x338] sm:$0xff]  ;;  %v713_v49 = vpack.c.bf16 %v255_v41, %v251_v39 }
  0x7e   :  { %758 = vmatprep.subr.bf16.mxu1 %v757_v18  ;;  %v763_v40 = vpack.c.bf16 %v224_v32, %v220_v31  ;;  %v228_v43 = vld [vmem:[#allocation10 + $0x2d0] sm:$0xff]  ;;  %v711_v48 = vpack.c.bf16 %v246_v38, %v242_v37  ;;  %v250_v50 = vld [vmem:[#allocation10 + $0x380] sm:$0xff]  ;;  %v263_v54 = vld [vmem:[#allocation10 + $0x3e8] sm:$0xff]  ;;  %v769_v55 = vpack.c.bf16 %v241_v47, %v237_v45  ;;  %v268_v45 = vlaneseq }
  0x7f   :  { %v232_v44 = vld [vmem:[#allocation10 + $0x2f0] sm:$0xff]  ;;  %v254_v51 = vld [vmem:[#allocation10 + $0x3a0] sm:$0xff]  ;;  %v245_v58 = vld [vmem:[#allocation10 + $0x358] sm:$0xff] }
  0x80   :  { %696 = vmatpush1.bf16.msra.mxu0 %v695_v52  ;;  %v259_v52 = vld [vmem:[#allocation10 + $0x3c8] sm:$0xff]  ;;  %v767_v53 = vpack.c.bf16 %v232_v44, %v228_v43  ;;  %v236_v56 = vld [vmem:[#allocation10 + $0x310] sm:$0xff]  ;;  %v249_v59 = vld [vmem:[#allocation10 + $0x378] sm:$0xff]  ;;  %v269_v47 = vshrl.u32 %v268_v45, 7 }
  0x81   :  { %698 = vmatprep.subr.bf16.mxu0 %v697_v60  ;;  %760 = vmatpush1.bf16.msra.mxu1 %v759_v28  ;;  %v240_v57 = vld [vmem:[#allocation10 + $0x330] sm:$0xff]  ;;  %v715_v60 = vpack.c.bf16 %v254_v51, %v250_v50  ;;  %v717_v61 = vpack.c.bf16 %v263_v54, %v259_v52  ;;  %v258_v62 = vld [vmem:[#allocation10 + $0x3c0] sm:$0xff]  ;;  %v773_v1 = vpack.c.bf16 %v249_v59, %v245_v58  ;;  %v253_v4 = vld [vmem:[#allocation10 + $0x398] sm:$0xff] }
  0x82   :  { %762 = vmatprep.subr.bf16.mxu1 %v761_v30  ;;  %v262_v63 = vld [vmem:[#allocation10 + $0x3e0] sm:$0xff]  ;;  %v771_v0 = vpack.c.bf16 %v240_v57, %v236_v56  ;;  %v244_v2 = vld [vmem:[#allocation10 + $0x350] sm:$0xff]  ;;  %v257_v5 = vld [vmem:[#allocation10 + $0x3b8] sm:$0xff]  ;;  %v274_v50 = vsub.s32 1, %v269_v47 }
  0x83   :  { %v248_v3 = vld [vmem:[#allocation10 + $0x370] sm:$0xff]  ;;  %v719_v6 = vpack.c.bf16 %v262_v63, %v258_v62  ;;  %v777_v8 = vpack.c.bf16 %v257_v5, %v253_v4  ;;  %v136_v13 = vld [vmem:[#allocation2] sm:$0xff]  ;;  %v450_v19 = vld [vmem:[#allocation11] sm:$0xff]  ;;  %v282_v63 = vsub.s32 3, %v269_v47 }
  0x84   :  { %700 = vmatpush1.bf16.msra.mxu0 %v699_v11  ;;  %v775_v7 = vpack.c.bf16 %v248_v3, %v244_v2  ;;  %v252_v9 = vld [vmem:[#allocation10 + $0x390] sm:$0xff]  ;;  %v261_v11 = vld [vmem:[#allocation10 + $0x3d8] sm:$0xff]  ;;  %v451_v20 = vld [vmem:[#allocation11 + $0x8] sm:$0xff] }
  0x85   :  { %702 = vmatprep.subr.bf16.mxu0 %v701_v12  ;;  %764 = vmatpush1.bf16.msra.mxu1 %v763_v40  ;;  %v256_v10 = vld [vmem:[#allocation10 + $0x3b0] sm:$0xff]  ;;  %v265_v12 = vld [vmem:[#allocation10 + $0x3f8] sm:$0xff]  ;;  %v786_v21 = vpack.c.bf16 %v451_v20, %v450_v19  ;;  %v454_v26 = vld [vmem:[#allocation11 + $0x20] sm:$0xff]  ;;  %v1002_v40 = vmov 0.0  }
  0x86   :  { %766 = vmatprep.subr.bf16.mxu1 %v765_v42  ;;  %v779_v14 = vpack.c.bf16 %v256_v10, %v252_v9  ;;  %v781_v15 = vpack.c.bf16 %v265_v12, %v261_v11  ;;  %v260_v16 = vld [vmem:[#allocation10 + $0x3d0] sm:$0xff]  ;;  %v455_v27 = vld [vmem:[#allocation11 + $0x28] sm:$0xff]  ;;  %v457_v30 = vld [vmem:[#allocation11 + $0x38] sm:$0xff] }
  0x87   :  { %v264_v17 = vld [vmem:[#allocation10 + $0x3f0] sm:$0xff]  ;;  %v792_v28 = vpack.c.bf16 %v455_v27, %v454_v26  ;;  %v458_v32 = vld [vmem:[#allocation11 + $0x40] sm:$0xff]  ;;  %v459_v33 = vld [vmem:[#allocation11 + $0x48] sm:$0xff] }
  0x88   :  { %704 = vmatpush1.bf16.msra.mxu0 %v703_v23  ;;  %v783_v18 = vpack.c.bf16 %v264_v17, %v260_v16  ;;  %v452_v23 = vld [vmem:[#allocation11 + $0x10] sm:$0xff]  ;;  %v798_v34 = vpack.c.bf16 %v459_v33, %v458_v32  ;;  %v462_v38 = vld [vmem:[#allocation11 + $0x60] sm:$0xff]  ;;  %v463_v39 = vld [vmem:[#allocation11 + $0x68] sm:$0xff] }
  0x89   :  { %706 = vmatprep.subr.bf16.mxu0 %v705_v24  ;;  %768 = vmatpush1.bf16.msra.mxu1 %v767_v53  ;;  %v453_v24 = vld [vmem:[#allocation11 + $0x18] sm:$0xff]  ;;  %v456_v29 = vld [vmem:[#allocation11 + $0x30] sm:$0xff]  ;;  %v804_v41 = vpack.c.bf16 %v463_v39, %v462_v38 }
  0x8a   :  { %770 = vmatprep.subr.bf16.mxu1 %v769_v55  ;;  %v789_v25 = vpack.c.bf16 %v453_v24, %v452_v23  ;;  %v795_v31 = vpack.c.bf16 %v457_v30, %v456_v29  ;;  %v464_v42 = vld [vmem:[#allocation11 + $0x70] sm:$0xff]  ;;  %v465_v43 = vld [vmem:[#allocation11 + $0x78] sm:$0xff] }
  0x8b   :  { %v807_v44 = vpack.c.bf16 %v465_v43, %v464_v42  ;;  %v604_v16 = vld [vmem:[%s1193_s6] ss:$0 sm:$0xff] }
  0x8c   :  { %708 = vmatpush1.bf16.msra.mxu0 %v707_v35  ;;  %v460_v35 = vld [vmem:[#allocation11 + $0x50] sm:$0xff] }
  0x8d   :  { %710 = vmatprep.subr.bf16.mxu0 %v709_v36  ;;  %772 = vmatpush1.bf16.msra.mxu1 %v771_v0  ;;  %v461_v36 = vld [vmem:[#allocation11 + $0x58] sm:$0xff]  ;;  %v278_v0 = vsub.s32 2, %v269_v47 }
  0x8e   :  { %774 = vmatprep.subr.bf16.mxu1 %v773_v1  ;;  %v801_v37 = vpack.c.bf16 %v461_v36, %v460_v35 }
  0x90   :  { %712 = vmatpush1.bf16.msra.mxu0 %v711_v48  ;;  %v270_v48 = vsub.s32 0, %v269_v47 }
  0x91   :  { %714 = vmatprep.subr.bf16.mxu0 %v713_v49  ;;  %776 = vmatpush1.bf16.msra.mxu1 %v775_v7  ;;  %v266_v49 = vld [vmem:[%s1191_s4] sm:$0xf] }
  0x92   :  { %778 = vmatprep.subr.bf16.mxu1 %v777_v8  ;;  %v271_v51 = vrot.slane %v266_v49, %v270_v48  ;;  %v275_v53 = vrot.slane %v266_v49, %v274_v50  ;;  %v283_v1 = vrot.slane %v266_v49, %v282_v63  ;;  %v279_v4 = vrot.slane %v266_v49, %v278_v0 }
  0x94   :  { %716 = vmatpush1.bf16.msra.mxu0 %v715_v60 }
  0x95   :  { %718 = vmatprep.subr.bf16.mxu0 %v717_v61  ;;  %780 = vmatpush1.bf16.msra.mxu1 %v779_v14 }
  0x96   :  { %782 = vmatprep.subr.bf16.mxu1 %v781_v15 }
  0x98   :  { %720 = vmatpush1.bf16.msra.mxu0 %v719_v6 }
  0x99   :  { %784 = vmatpush1.bf16.msra.mxu1 %v783_v18  ;;  %785 = vmatprep.subr.bf16.mxu0 %v1000_v22 }
  0x9b   :  { %353 = vmatmul.mubr.f32.vlgmr.msra.gmra.mrb[0].mxu0 %v136_v13 }
  0x9c   :  { %424 = vmatmul.mubr.f32.vlgmr.msra.gmra.mrb[0].mxu1 %v136_v13  ;;  %787 = vmatpush3.bf16.msra.mxu0 %v786_v21 }
  0x9d   :  { %788 = vmatprep.subr.bf16.mxu0 %v1000_v22  ;;  %654 = vmatprep.mubr.msk.f32.mxu0 %vm1001_vm0, %v1002_v40 }
  0xa0   :  { %790 = vmatpush3.bf16.msra.mxu0 %v789_v25 }
  0xa1   :  { %791 = vmatprep.subr.bf16.mxu0 %v1000_v22 }
  0xa4   :  { %793 = vmatpush3.bf16.msra.mxu0 %v792_v28 }
  0xa5   :  { %794 = vmatprep.subr.bf16.mxu0 %v1000_v22 }
  0xa8   :  { %796 = vmatpush3.bf16.msra.mxu0 %v795_v31 }
  0xa9   :  { %797 = vmatprep.subr.bf16.mxu0 %v1000_v22 }
  0xac   :  { %799 = vmatpush3.bf16.msra.mxu0 %v798_v34 }
  0xad   :  { %800 = vmatprep.subr.bf16.mxu0 %v1000_v22 }
  0xb0   :  { %802 = vmatpush3.bf16.msra.mxu0 %v801_v37 }
  0xb1   :  { %803 = vmatprep.subr.bf16.mxu0 %v1000_v22 }
  0xb4   :  { %805 = vmatpush3.bf16.msra.mxu0 %v804_v41 }
  0xb5   :  { %806 = vmatprep.subr.bf16.mxu0 %v1000_v22 }
  0xb8   :  { %808 = vmatpush3.bf16.msra.mxu0 %v807_v44 }
 0x16e   :  { %v354_v52 = vpop.f32.mrb[0].mxu0 }
 0x16f   :  { %v355_v54 = vadd.f32 %v354_v52, %v271_v51  ;;  %v356_v55 = vpop.f32.mrb[1].mxu0  ;;  %v425_v59 = vpop.f32.mrb[0].mxu1 }
 0x170   :  { %v357_v57 = vadd.f32 %v356_v55, %v275_v53  ;;  %v427_v60 = vpop.f32.mrb[1].mxu1  ;;  %v426_v7 = vadd.f32 %v425_v59, %v279_v4 }
 0x171   :  { %v602_v56 = vmul.f32 -1.442695, %v355_v54  ;;  %v428_v5 = vadd.f32 %v427_v60, %v283_v1 }
 0x172   :  { %v603_v58 = vmul.f32 -1.442695, %v357_v57 }
 0x173   :  { %823 = vpow2.f32 %v602_v56 }
 0x174   :  { %825 = vpow2.f32 %v603_v58 }
 0x17d   :  { %v824_v61 = vpop.eup %823 }
 0x17e   :  { %v433_v62 = vadd.f32 1.0, %v824_v61  ;;  %v826_v2 = vpop.eup %825 }
 0x17f   :  { %v439_v3 = vadd.f32 1.0, %v826_v2 }
 0x180   :  { %827 = vrcp.f32 %v433_v62 }
 0x181   :  { %829 = vrcp.f32 %v439_v3 }
 0x18a   :  { %v828_v6 = vpop.eup %827 }
 0x18b   :  { %v442_v8 = vmul.f32 %v828_v6, %v428_v5  ;;  %v830_v10 = vpop.eup %829 }
 0x18c   :  { %v446_v11 = vsub.f32 1.0, %v830_v10  ;;  %v448_v14 = vmul.f32 %v830_v10, %v1136_v46 }
 0x18d   :  { %v443_v9 = vadd.f32 %v442_v8, %v426_v7 }
 0x18f   :  { %831 = vtanh.f32 %v443_v9 }
 0x199   :  { %v832_v12 = vpop.eup %831 }
 0x19a   :  { %v447_v13 = vmul.f32 %v832_v12, %v446_v11 }
 0x19c   :  { %v449_v15 = vadd.f32 %v448_v14, %v447_v13 }
 0x19e   :  { %655 = vmatmul.mubr.f32.vlgmr.msra.gmra.mrb[2].mxu0 %v449_v15  ;;  %554 = vst [vmem:[#allocation14] sm:$0xff] %v449_v15 }
 0x271   :  { %v539_v17 = vpop.f32.mrb[2].mxu0 }
 0x272   :  { %v540_v18 = vadd.f32 %v604_v16, %v539_v17  ;;  %v656_v19 = vpop.f32.mrb[3].mxu0 }
 0x274   :  { %543 = vmax.xlane.f32.xlu0 %v540_v18 }
 0x301   :  { %v544_v20 = vpop.xlane.xlu0 %543 }
 0x302   :  { %v545_v21 = vsub.f32 %v540_v18, %v544_v20 }
 0x304   :  { %v546_v22 = vmul.f32 1.442695, %v545_v21 }
 0x306   :  { %833 = vpow2.f32 %v546_v22 }
 0x310   :  { %v834_v23 = vpop.eup %833 }
 0x311   :  { %548 = vadd.xlane.f32.xlu0 %v834_v23 }
 0x312   :  { %946 = shalt.err (!%p943_p11)
}
 0x313   :  { %s947_s17 = scalar_lea.hbm %s1195_s8, 128 }
 0x314   :  { %p948_p12 = scmp.ne.s32.totalorder %s1195_s8, %s947_s17  ;;  %p951_p13 = scmp.lt.u32.totalorder %s947_s17, %s1195_s8 }
 0x316   :  { %p953_p0 = pnand %p951_p13, %p948_p12 }
 0x318   :  { %956 = shalt.err (!%p953_p0)
}
 0x319   :  { %574 = dma.vmem_to_hbm [thread:$0]  %s572_s13, 128, %s1195_s8, [#allocation15]  }
 0x31a   :  { %s1004_s20 = smov [#allocation13]  }
 0x31b   :  { %s561_s21 = sshll.u32 %s1004_s20, 4  ;;  %s562_s21 = int_to_ptr.vmem [resolvable:$true] %s561_s21 }
 0x31c   :  { %s957_s22 = scalar_lea.vmem %s562_s21, 128  ;;  %p962_p2 = scmp.lt.s32.totalorder %s562_s21, %s562_s21 }
 0x31d   :  { %p958_p1 = scmp.ne.s32.totalorder %s562_s21, %s957_s22  ;;  %p963_p3 = scmp.lt.s32.totalorder %s957_s22, %s957_s22 }
 0x31f   :  { %p964_p4 = por %p963_p3, %p962_p2 }
 0x321   :  { %p965_p5 = pnand %p964_p4, %p958_p1 }
 0x39e   :  { %v549_v46 = vpop.xlane.xlu0 %548 }
 0x39f   :  { %835 = vlog2.f32 %v549_v46 }
 0x3a9   :  { %v836_v24 = vpop.eup %835 }
 0x3aa   :  { %v551_v25 = vmul.f32 0.6931472, %v836_v24 }
 0x3ac   :  { %v552_v26 = vsub.f32 %v545_v21, %v551_v25 }
 0x3ae   :  { %553 = vst [vmem:[#allocation13] sm:$0xff] %v552_v26 }
 0x3af   :  { %968 = shalt.err (!%p965_p5)
}
 0x3b0   :  { %s969_s8 = scalar_lea.hbm %s1194_s7, 128 }
 0x3b1   :  { %p970_p6 = scmp.ne.s32.totalorder %s1194_s7, %s969_s8  ;;  %p973_p7 = scmp.lt.u32.totalorder %s969_s8, %s1194_s7 }
 0x3b3   :  { %p975_p8 = pnand %p973_p7, %p970_p6 }
 0x3b5   :  { %978 = shalt.err (!%p975_p8)
}
 0x3b6   :  { %564 = dma.vmem_to_hbm [thread:$0]  %s562_s21, 128, %s1194_s7, [#allocation5]  }
 0x3b7   :  { %987 = dma.done.wait [#allocation5], 128  }
 0x3b8   :  { %988 = vsyncadd [#allocation5], 4294967168 }
 0x3b9   :  { %989 = dma.done.wait [#allocation15], 128  }
 0x3ba   :  { %990 = vsyncadd [#allocation15], 4294967168 }
 0x3bb   :  { %581 = vsyncpa [#allocation4], 1 }
 0x3bc   :  { %582 = vsyncpa [#allocation9], 1 }
 0x3bd   :  { %583 = vsyncpa [#allocation12], 1 }
 0x3be   :  { %584 = vsyncpa [#allocation5], 1 }
 0x3bf   :  { %585 = vsyncpa [#allocation15], 1 }
 0x3c0   :  { %586 = vsyncpa [#allocation6], 1 }

</bundles_post_ra>
